<compile_context>
chip_gen: v7x
topology: tpu7x:2x2x1
jax: 0.10.0
libtpu: 0.0.40
codegen_flags: <defaults>
</compile_context>

<pallas_src>
import functools
import math

import jax
import jax.numpy as jnp
from jax import lax
from jax.experimental import pallas as pl
from jax.experimental.pallas import tpu as pltpu


def _round_up(x, m):
    return ((x + m - 1) // m) * m


def _row_tile(n):
    # Largest "nice" row tile that divides n (n is always a multiple of 16 here).
    for t in (1024, 512, 256, 128, 64, 32, 16, 8):
        if n % t == 0:
            return t
    return n


def _vmem_capacity_bytes():
    try:
        info = pltpu.get_tpu_info()
        cap = getattr(info, "vmem_capacity_bytes", None)
        if cap:
            return int(cap)
    except Exception:
        pass
    return 64 * 1024 * 1024  # conservative default (v7x per-core VMEM)


def _has_wide_mxu():
    # v6e / v7x have 256x256 MXU passes; v2-v5 are 128-wide.
    try:
        kind = jax.devices()[0].device_kind.lower()
    except Exception:
        return True
    return not any(tag in kind for tag in ("v2", "v3", "v4", "v5"))


# -----------------------------------------------------------------------------
# Projection pre-pass: y = x @ W + b  (bf16 MXU operands, f32 accumulate)
# -----------------------------------------------------------------------------
def _linear_kernel(x_ref, w_ref, b_ref, y_ref):
    y = jnp.dot(x_ref[...], w_ref[...], preferred_element_type=jnp.float32) + b_ref[...]
    y_ref[...] = y.astype(y_ref.dtype)


def _linear(x, w, b, row_tile, vmem_limit):
    n, din = x.shape
    dout = w.shape[1]
    return pl.pallas_call(
        _linear_kernel,
        out_shape=jax.ShapeDtypeStruct((n, dout), jnp.bfloat16),
        grid_spec=pltpu.PrefetchScalarGridSpec(
            num_scalar_prefetch=0,
            grid=(n // row_tile,),
            in_specs=[
                pl.BlockSpec((row_tile, din), lambda i: (i, 0)),
                pl.BlockSpec((din, dout), lambda i: (0, 0)),
                pl.BlockSpec((1, dout), lambda i: (0, 0)),
            ],
            out_specs=pl.BlockSpec((row_tile, dout), lambda i: (i, 0)),
        ),
        compiler_params=pltpu.CompilerParams(
            dimension_semantics=("parallel",),
            vmem_limit_bytes=vmem_limit),
    )(x, w, b)


# Fused K/V projection: one pass over the key/value rows, one (n, 2*Dp) output
# slab so the attention kernel DMAs K and V together per kv step.
def _kv_linear_kernel(xk_ref, xv_ref, wk_ref, wv_ref, b_ref, y_ref, *, dp):
    yk = jnp.dot(xk_ref[...], wk_ref[...], preferred_element_type=jnp.float32) + b_ref[:, :dp]
    yv = jnp.dot(xv_ref[...], wv_ref[...], preferred_element_type=jnp.float32) + b_ref[:, dp:]
    y_ref[:, :dp] = yk.astype(y_ref.dtype)
    y_ref[:, dp:] = yv.astype(y_ref.dtype)


def _kv_linear(xk, xv, wk, wv, b, row_tile, vmem_limit):
    n, dp = xk.shape
    return pl.pallas_call(
        functools.partial(_kv_linear_kernel, dp=dp),
        out_shape=jax.ShapeDtypeStruct((n, 2 * dp), jnp.bfloat16),
        grid_spec=pltpu.PrefetchScalarGridSpec(
            num_scalar_prefetch=0,
            grid=(n // row_tile,),
            in_specs=[
                pl.BlockSpec((row_tile, dp), lambda i: (i, 0)),
                pl.BlockSpec((row_tile, dp), lambda i: (i, 0)),
                pl.BlockSpec((dp, dp), lambda i: (0, 0)),
                pl.BlockSpec((dp, dp), lambda i: (0, 0)),
                pl.BlockSpec((1, 2 * dp), lambda i: (0, 0)),
            ],
            out_specs=pl.BlockSpec((row_tile, 2 * dp), lambda i: (i, 0)),
        ),
        compiler_params=pltpu.CompilerParams(
            dimension_semantics=("parallel",),
            vmem_limit_bytes=vmem_limit),
    )(xk, xv, wk, wv, b)


# -----------------------------------------------------------------------------
# Flash attention (online softmax over kv tiles) with exact attn-weights output
# -----------------------------------------------------------------------------
def _flash_attn_kernel(q_ref, kv_ref, *refs, dp, tk, n_k, lk_valid, need_weights):
    if need_weights:
        ctx_ref, attn_ref, m_ref, l_ref, m_hist_ref = refs
    else:
        ctx_ref, m_ref, l_ref = refs
        attn_ref = m_hist_ref = None

    ki = pl.program_id(2)

    @pl.when(ki == 0)
    def _init():
        m_ref[...] = jnp.full_like(m_ref, -jnp.inf)
        l_ref[...] = jnp.zeros_like(l_ref)
        ctx_ref[...] = jnp.zeros_like(ctx_ref)

    q = q_ref[...]                       # (tq, Dp) bf16
    k = kv_ref[:, :dp]                   # (tk, Dp) bf16  (static, lane-aligned slice)
    v = kv_ref[:, dp:]                   # (tk, Dp) bf16

    # Scores: contract the last (lane) dim of both operands -> no K transpose.
    s = lax.dot_general(q, k, (((1,), (1,)), ((), ())),
                        preferred_element_type=jnp.float32)          # (tq, tk) f32

    # Mask padded key columns (only emitted when Lk was actually padded).
    if lk_valid is not None:
        col = ki * tk + lax.broadcasted_iota(jnp.int32, s.shape, 1)
        s = jnp.where(col < lk_valid, s, -jnp.inf)

    # Online softmax update.
    m_prev = m_ref[...]
    m_new = jnp.maximum(m_prev, jnp.max(s, axis=-1, keepdims=True))
    alpha = jnp.exp(m_prev - m_new)
    p = jnp.exp(s - m_new)                                           # (tq, tk) f32

    if need_weights:
        # Park per-step probabilities (relative to this step's running max) and
        # remember that max; the finalize rescales each slab with a VPU multiply
        # instead of re-running exp over the whole (tq, Lkp) block.
        off = pl.multiple_of(ki * tk, tk)
        attn_ref[:, pl.ds(off, tk)] = p.astype(attn_ref.dtype)
        m_hist_ref[ki] = m_new

    l_ref[...] = alpha * l_ref[...] + jnp.sum(p, axis=-1, keepdims=True)
    m_ref[...] = m_new
    ctx_ref[...] = alpha * ctx_ref[...] + jnp.dot(
        p.astype(v.dtype), v, preferred_element_type=jnp.float32)

    @pl.when(ki == n_k - 1)
    def _finalize():
        # Exact reciprocal: once per q tile, negligible cost, keeps the returned
        # softmax weights free of approx-reciprocal error.
        inv_l = 1.0 / l_ref[...]
        ctx_ref[...] = ctx_ref[...] * inv_l
        if need_weights:
            m_fin = m_ref[...]
            for j in range(n_k):
                sc = jnp.exp(m_hist_ref[j] - m_fin) * inv_l          # (tq, 1)
                slab = attn_ref[:, j * tk:(j + 1) * tk]
                attn_ref[:, j * tk:(j + 1) * tk] = (slab * sc).astype(attn_ref.dtype)


def scaled_dot_product_attention(query, key, value, wq, bq, wk, bk, wv, bv,
                                 mask=None, need_weights=True,
                                 weights_dtype=jnp.bfloat16):
    """query: (B, Lq, D) f32; key/value: (B, Lk, D) f32.
    wq/wk/wv: (D, D) laid out (in, out) so y = x @ W + b; bq/bk/bv: (D,).
    Returns (context (B, Lq, D) f32, attn (B, Lq, Lk) weights_dtype or None)."""
    # TODO(synk): optional `mask` argument (masked_fill with -inf) not wired; mask=None only.
    assert mask is None
    B, Lq, D = query.shape
    Lk = key.shape[1]
    assert value.shape[1] == Lk
    scale = 1.0 / math.sqrt(D)

    # Lane-dense padding of d_model: padded W rows/cols & bias entries are zero,
    # so padded Q/K/V columns are exactly zero and do not change the scores.
    Dp = _round_up(D, 128)

    # Generation-aware VMEM / tile budgeting.
    vmem_cap = _vmem_capacity_bytes()
    vmem_limit = int(vmem_cap * 3 // 4)
    budget = int(vmem_cap * 55 // 100)
    wide_mxu = _has_wide_mxu()

    tq = min(256 if wide_mxu else 128, _round_up(Lq, 16))   # bf16 native (16,128)
    tk = min(512 if wide_mxu else 256, _round_up(Lk, 128))
    Lkp = _round_up(Lk, tk)
    n_k = Lkp // tk
    attn_bytes = jnp.dtype(weights_dtype).itemsize

    def vmem_est(tq_):
        est = 2 * tq_ * Dp * 4           # resident ctx block (f32, double-buffered)
        est += 2 * tq_ * Dp * 2          # Q block (bf16)
        est += 2 * tk * 2 * Dp * 2       # fused K|V block (bf16)
        est += 2 * 2 * tq_ * 128 * 4     # m / l scratch (lane-padded)
        if need_weights:
            est += 2 * tq_ * Lkp * attn_bytes   # resident attn block
            est += n_k * tq_ * 128 * 4          # per-kv-step max history
        return est

    while tq > 16 and vmem_est(tq) > budget:
        tq = max(16, ((tq // 2) // 16) * 16)
    Lqp = _round_up(Lq, tq)
    n_q = Lqp // tq

    # Fold the 1/sqrt(D) softmax scale into the Q projection (zero per-score muls).
    wq = wq * scale
    bq = bq * scale

    pad_w = lambda w: jnp.pad(w, ((0, Dp - D), (0, Dp - D))).astype(jnp.bfloat16)
    pad_b = lambda b: jnp.pad(b, (0, Dp - D)).astype(jnp.float32)

    def pad_act(x, lp):
        # pad + cast fused by XLA; kernels read bf16 (half the HBM traffic).
        return jnp.pad(x, ((0, 0), (0, lp - x.shape[1]), (0, Dp - D))).astype(jnp.bfloat16)

    q_rows = pad_act(query, Lqp).reshape(B * Lqp, Dp)
    b_kv = jnp.concatenate([pad_b(bk), pad_b(bv)]).reshape(1, 2 * Dp)

    rt_q = _row_tile(B * Lqp)
    rt_k = _row_tile(B * Lkp)

    # Fused projection pre-pass over batch-flattened rows (done once, not per tile).
    Q = _linear(q_rows, pad_w(wq), pad_b(bq).reshape(1, Dp), rt_q, vmem_limit)
    Q = Q.reshape(B, Lqp, Dp)

    if key is value:
        # Self-attention fast path: one read of the shared rows, concat weights.
        kv_rows = pad_act(key, Lkp).reshape(B * Lkp, Dp)
        w_kv = jnp.concatenate([pad_w(wk), pad_w(wv)], axis=1)
        KV = _linear(kv_rows, w_kv, b_kv, rt_k, vmem_limit)
    else:
        k_rows = pad_act(key, Lkp).reshape(B * Lkp, Dp)
        v_rows = pad_act(value, Lkp).reshape(B * Lkp, Dp)
        KV = _kv_linear(k_rows, v_rows, pad_w(wk), pad_w(wv), b_kv, rt_k, vmem_limit)
    KV = KV.reshape(B, Lkp, 2 * Dp)

    kernel = functools.partial(
        _flash_attn_kernel, dp=Dp, tk=tk, n_k=n_k,
        lk_valid=Lk if Lk != Lkp else None, need_weights=need_weights)

    ctx_shape = jax.ShapeDtypeStruct((B, Lqp, Dp), jnp.float32)
    ctx_spec = pl.BlockSpec((None, tq, Dp), lambda b, qi, ki: (b, qi, 0))
    scratch = [pltpu.VMEM((tq, 1), jnp.float32),     # running max
               pltpu.VMEM((tq, 1), jnp.float32)]     # running sum-exp
    if need_weights:
        out_shape = (ctx_shape,
                     jax.ShapeDtypeStruct((B, Lqp, Lkp), weights_dtype))
        out_specs = (ctx_spec,
                     pl.BlockSpec((None, tq, Lkp), lambda b, qi, ki: (b, qi, 0)))
        scratch.append(pltpu.VMEM((n_k, tq, 1), jnp.float32))   # per-step max history
    else:
        out_shape = ctx_shape
        out_specs = ctx_spec

    out = pl.pallas_call(
        kernel,
        out_shape=out_shape,
        grid_spec=pltpu.PrefetchScalarGridSpec(
            num_scalar_prefetch=0,
            grid=(B, n_q, n_k),
            in_specs=[
                pl.BlockSpec((None, tq, Dp), lambda b, qi, ki: (b, qi, 0)),       # Q
                pl.BlockSpec((None, tk, 2 * Dp), lambda b, qi, ki: (b, ki, 0)),   # K|V fused
            ],
            out_specs=out_specs,
            scratch_shapes=scratch,
        ),
        compiler_params=pltpu.CompilerParams(
            dimension_semantics=("parallel", "parallel", "arbitrary"),
            vmem_limit_bytes=vmem_limit,
        ),
    )(Q, KV)

    if need_weights:
        ctx, attn = out
        return ctx[:, :Lq, :D], attn[:, :Lq, :Lk]
    return out[:, :Lq, :D], None


def _reference(query, key, value, wq, bq, wk, bk, wv, bv):
    D = query.shape[-1]
    Q = query @ wq + bq
    K = key @ wk + bk
    V = value @ wv + bv
    score = jnp.einsum("bqd,bkd->bqk", Q, K) / jnp.sqrt(jnp.float32(D))
    attn = jax.nn.softmax(score, axis=-1)
    ctx = jnp.einsum("bqk,bkd->bqd", attn, V)
    return ctx, attn


if __name__ == "__main__":
    B, Lq, Lk, D = 2, 8, 8, 32

    key0 = jax.random.PRNGKey(0)
    ks = jax.random.split(key0, 9)
    query = jax.random.normal(ks[0], (B, Lq, D), dtype=jnp.float32)
    keyt = jax.random.normal(ks[1], (B, Lk, D), dtype=jnp.float32)
    value = jax.random.normal(ks[2], (B, Lk, D), dtype=jnp.float32)

    # Deterministic parameter init (PyTorch Linear uses U(-1/sqrt(in), 1/sqrt(in))).
    bound = 1.0 / (D ** 0.5)
    init = lambda k, shape: jax.random.uniform(k, shape, jnp.float32, -bound, bound)
    wq = init(ks[3], (D, D))   # stored as (in, out): y = x @ W + b
    wk = init(ks[4], (D, D))
    wv = init(ks[5], (D, D))
    bq = init(ks[6], (D,))
    bk = init(ks[7], (D,))
    bv = init(ks[8], (D,))

    ctx, attn = scaled_dot_product_attention(query, keyt, value,
                                             wq, bq, wk, bk, wv, bv)
    jax.block_until_ready((ctx, attn))

    ctx_ref, attn_ref = _reference(query, keyt, value, wq, bq, wk, bk, wv, bv)
    assert ctx.shape == (B, Lq, D) and attn.shape == (B, Lq, Lk)
    # bf16 MXU operands / bf16 attn weights (f32 accumulation) -> bf16 tolerance.
    assert jnp.allclose(ctx, ctx_ref, atol=3e-2, rtol=3e-2)
    assert jnp.allclose(attn.astype(jnp.float32), attn_ref, atol=3e-2, rtol=3e-2)

    print("KERNEL_OK")
</pallas_src>

<mosaic_0001>
module attributes {stable_mosaic.version = 11 : i64} {
  func.func @_linear_kernel(%arg0: i32, %arg1: memref<32x128xbf16, #tpu.memory_space<vmem>>, %arg2: memref<128x128xbf16, #tpu.memory_space<vmem>>, %arg3: memref<1x128xf32, #tpu.memory_space<vmem>>, %arg4: memref<32x128xbf16, #tpu.memory_space<vmem>>) attributes {dimension_semantics = [#tpu.dimension_semantics<parallel>], iteration_bounds = array<i64: 1>, scalar_prefetch = 0 : i64, scratch_operands = 0 : i64, tpu.core_type = #tpu.core_type<tc>, window_params = [{transform_indices = @transform_0, window_bounds = array<i64: 32, 128>}, {pipeline_mode = #tpu.pipeline_mode<synchronous>, transform_indices = @transform_1, window_bounds = array<i64: 128, 128>}, {pipeline_mode = #tpu.pipeline_mode<synchronous>, transform_indices = @transform_2, window_bounds = array<i64: 1, 128>}, {transform_indices = @transform_3, window_bounds = array<i64: 32, 128>}]} {
    %c0 = arith.constant 0 : index
    %c0_0 = arith.constant 0 : index
    %0 = vector.load %arg1[%c0, %c0_0] : memref<32x128xbf16, #tpu.memory_space<vmem>>, vector<32x128xbf16>
    %c0_1 = arith.constant 0 : index
    %c0_2 = arith.constant 0 : index
    %1 = vector.load %arg2[%c0_1, %c0_2] : memref<128x128xbf16, #tpu.memory_space<vmem>>, vector<128x128xbf16>
    %cst = arith.constant dense<0.000000e+00> : vector<32x128xf32>
    %2 = tpu.matmul %0, %1, %cst {dimension_numbers = #tpu.dot_dimension_numbers<[1], [0], [0], [1], [0, 0, 1, 1], [], []>} : vector<32x128xbf16>, vector<128x128xbf16>, vector<32x128xf32> -> vector<32x128xf32>
    %c0_3 = arith.constant 0 : index
    %c0_4 = arith.constant 0 : index
    %3 = vector.load %arg3[%c0_3, %c0_4] : memref<1x128xf32, #tpu.memory_space<vmem>>, vector<1x128xf32>
    %4 = vector.broadcast %3 : vector<1x128xf32> to vector<32x128xf32>
    %5 = arith.addf %2, %4 : vector<32x128xf32>
    %6 = arith.truncf %5 : vector<32x128xf32> to vector<32x128xbf16>
    %c0_5 = arith.constant 0 : index
    %c0_6 = arith.constant 0 : index
    %7 = vector.load %arg4[%c0_5, %c0_6] : memref<32x128xbf16, #tpu.memory_space<vmem>>, vector<32x128xbf16>
    tpu.vector_store %arg4[%c0_5, %c0_6], %6 {strides = array<i32>} : memref<32x128xbf16, #tpu.memory_space<vmem>>, vector<32x128xbf16>,
    return
  }
  func.func @transform_0(%arg0: i32) -> (i32, i32) {
    %c0_i32 = arith.constant 0 : i32
    %c0_i32_0 = arith.constant 0 : i32
    return %arg0, %c0_i32 : i32, i32
  }
  func.func @transform_1(%arg0: i32) -> (i32, i32) {
    %c0_i32 = arith.constant 0 : i32
    %c0_i32_0 = arith.constant 0 : i32
    %c0_i32_1 = arith.constant 0 : i32
    return %c0_i32, %c0_i32_0 : i32, i32
  }
  func.func @transform_2(%arg0: i32) -> (i32, i32) {
    %c0_i32 = arith.constant 0 : i32
    %c0_i32_0 = arith.constant 0 : i32
    %c0_i32_1 = arith.constant 0 : i32
    return %c0_i32, %c0_i32_0 : i32, i32
  }
  func.func @transform_3(%arg0: i32) -> (i32, i32) {
    %c0_i32 = arith.constant 0 : i32
    %c0_i32_0 = arith.constant 0 : i32
    return %arg0, %c0_i32 : i32, i32
  }
}

</mosaic_0001>

<bundles_post_ra>
// kernel: tpu_custom_call.1
= control target key start
LH: loop header
LB: loop body
LE: loop exit
PB: predicated region body
PF: predicated region fallthrough
CT: control target
= control target key end

     0   :  { %8 = vsyncpa [#allocation3], 0  ;;  %s438_s0 = inlined_call_operand.hbm [shape: bf16[32,128], index: 0, kind: input, shape index: {}]   ;;  %s439_s1 = inlined_call_operand.hbm [shape: bf16[128,128], index: 1, kind: input, shape index: {}]   ;;  %s440_s2 = inlined_call_operand.vmem [shape: f32[1,128], index: 2, kind: input, shape index: {}]   ;;  %s441_s3 = inlined_call_operand.hbm [shape: bf16[32,128], index: 3, kind: output, shape index: {}]  }
   0x1   :  { %9 = vsyncpa [#allocation6], 0 }
   0x2   :  { %10 = vsyncpa [#allocation4], 0  ;;  %s365_s12 = smov [#allocation2]   ;;  %s293_s16 = scalar_lea.hbm %s438_s0, 256 }
   0x3   :  { %s16_s13 = sshll.u32 %s365_s12, 4  ;;  %p294_p0 = scmp.ne.s32.totalorder %s438_s0, %s293_s16  ;;  %s17_s13 = int_to_ptr.vmem [resolvable:$true] %s16_s13 }
   0x4   :  { %p297_p1 = scmp.lt.u32.totalorder %s293_s16, %s438_s0 }
   0x6   :  { %p299_p2 = pnand %p297_p1, %p294_p0 }
   0x8   :  { %302 = shalt.err (!%p299_p2)
}
   0x9   :  { %s303_s21 = scalar_lea.vmem %s17_s13, 256  ;;  %p308_p4 = scmp.lt.s32.totalorder %s17_s13, %s17_s13 }
   0xa   :  { %p304_p3 = scmp.ne.s32.totalorder %s17_s13, %s303_s21  ;;  %p309_p5 = scmp.lt.s32.totalorder %s303_s21, %s303_s21 }
   0xc   :  { %p310_p6 = por %p309_p5, %p308_p4 }
   0xe   :  { %p311_p7 = pnand %p310_p6, %p304_p3 }
  0x10   :  { %314 = shalt.err (!%p311_p7)
}
  0x11   :  { %s366_s22 = smov 64   ;;  %s367_s23 = smov 4  }
  0x12   :  { %22 = dma.hbm_to_vmem [thread:$0]  %s438_s0, 256, %s17_s13, [#allocation3], %s366_s22, %s366_s22, %s367_s23  }
  0x13   :  { %s368_s26 = smov [#allocation5]   ;;  %s315_s30 = scalar_lea.hbm %s439_s1, 1024 }
  0x14   :  { %s28_s27 = sshll.u32 %s368_s26, 4  ;;  %p316_p8 = scmp.ne.s32.totalorder %s439_s1, %s315_s30  ;;  %s29_s27 = int_to_ptr.vmem [resolvable:$true] %s28_s27 }
  0x15   :  { %p319_p9 = scmp.lt.u32.totalorder %s315_s30, %s439_s1 }
  0x17   :  { %p321_p10 = pnand %p319_p9, %p316_p8 }
  0x19   :  { %324 = shalt.err (!%p321_p10)
}
  0x1a   :  { %s325_s8 = scalar_lea.vmem %s29_s27, 1024  ;;  %p330_p12 = scmp.lt.s32.totalorder %s29_s27, %s29_s27 }
  0x1b   :  { %p326_p11 = scmp.ne.s32.totalorder %s29_s27, %s325_s8  ;;  %p331_p13 = scmp.lt.s32.totalorder %s325_s8, %s325_s8 }
  0x1d   :  { %p332_p0 = por %p331_p13, %p330_p12 }
  0x1f   :  { %p333_p1 = pnand %p332_p0, %p326_p11 }
  0x21   :  { %336 = shalt.err (!%p333_p1)
}
  0x22   :  { %34 = dma.hbm_to_vmem [thread:$0]  %s439_s1, 1024, %s29_s27, [#allocation6], %s366_s22, %s366_s22, %s367_s23  }
  0x23   :  { %359 = dma.done.wait [#allocation3], 256  }
  0x24   :  { %360 = vsyncadd [#allocation3], 4294967040 }
  0x25   :  { %361 = dma.done.wait [#allocation6], 1024  }
  0x26   :  { %362 = vsyncadd [#allocation6], 4294966272  ;;  %v283_v0 = vld [vmem:[#allocation5] sm:$0xff]   ;;  %v284_v1 = vld [vmem:[#allocation5 + $0x8] sm:$0xff]   ;;  %s369_s11 = smov [#allocation7]  }
  0x27   :  { %258 = vmatprep.subr.bf16.mxu0 %v283_v0  ;;  %v285_v2 = vld [vmem:[#allocation5 + $0x10] sm:$0xff]   ;;  %v286_v3 = vld [vmem:[#allocation5 + $0x18] sm:$0xff]   ;;  %v287_v5 = vld [vmem:[#allocation5 + $0x20] sm:$0xff]   ;;  %s205_s12 = sshll.u32 %s369_s11, 4  ;;  %s206_s12 = int_to_ptr.vmem [resolvable:$true] %s205_s12 }
  0x28   :  { %259 = vmatpush3.bf16.msra.mxu0 %v283_v0  ;;  %v291_v4 = vld [vmem:[#allocation2] sm:$0xff]   ;;  %v288_v6 = vld [vmem:[#allocation5 + $0x28] sm:$0xff]   ;;  %v290_v8 = vld [vmem:[#allocation5 + $0x38] sm:$0xff]   ;;  %s337_s13 = scalar_lea.vmem %s206_s12, 256  ;;  %p342_p3 = scmp.lt.s32.totalorder %s206_s12, %s206_s12 }
  0x29   :  { %260 = vmatprep.subr.bf16.mxu0 %v284_v1  ;;  %274 = vmatprep.mubr.bf16.mxu0 %v291_v4  ;;  %v289_v7 = vld [vmem:[#allocation5 + $0x30] sm:$0xff]   ;;  %v292_v9 = vld [vmem:[#allocation2 + $0x8] sm:$0xff]   ;;  %p338_p2 = scmp.ne.s32.totalorder %s206_s12, %s337_s13  ;;  %p343_p4 = scmp.lt.s32.totalorder %s337_s13, %s337_s13 }
  0x2a   :  { %v218_v11 = vld [vmem:[%s440_s2] ss:$0 sm:$0xff] }
  0x2b   :  { %p344_p5 = por %p343_p4, %p342_p3 }
  0x2c   :  { %261 = vmatpush3.bf16.msra.mxu0 %v284_v1 }
  0x2d   :  { %262 = vmatprep.subr.bf16.mxu0 %v285_v2  ;;  %p345_p6 = pnand %p344_p5, %p338_p2 }
  0x30   :  { %263 = vmatpush3.bf16.msra.mxu0 %v285_v2 }
  0x31   :  { %264 = vmatprep.subr.bf16.mxu0 %v286_v3 }
  0x34   :  { %265 = vmatpush3.bf16.msra.mxu0 %v286_v3 }
  0x35   :  { %266 = vmatprep.subr.bf16.mxu0 %v287_v5 }
  0x38   :  { %267 = vmatpush3.bf16.msra.mxu0 %v287_v5 }
  0x39   :  { %268 = vmatprep.subr.bf16.mxu0 %v288_v6 }
  0x3c   :  { %269 = vmatpush3.bf16.msra.mxu0 %v288_v6 }
  0x3d   :  { %270 = vmatprep.subr.bf16.mxu0 %v289_v7 }
  0x40   :  { %271 = vmatpush3.bf16.msra.mxu0 %v289_v7 }
  0x41   :  { %272 = vmatprep.subr.bf16.mxu0 %v290_v8 }
  0x44   :  { %273 = vmatpush3.bf16.msra.mxu0 %v290_v8 }
  0x47   :  { %275 = vmatmul.mubr.bf16.vlgmr.msra.gmra.mrb[0].mxu0 %v292_v9 }
 0x11a   :  { %v276_v10 = vpop.f32.mrb[0].mxu0 }
 0x11b   :  { %v165_v12 = vpop.f32.mrb[1].mxu0  ;;  %v174_v14 = vadd.f32 %v276_v10, %v218_v11 }
 0x11c   :  { %v277_v13 = vpop.f32.mrb[2].mxu0  ;;  %v166_v17 = vadd.f32 %v218_v11, %v165_v12 }
 0x11d   :  { %v177_v15 = vadd.f32 %v277_v13, %v218_v11  ;;  %v168_v16 = vpop.f32.mrb[3].mxu0 }
 0x11e   :  { %v169_v18 = vadd.f32 %v218_v11, %v168_v16 }
 0x11f   :  { %v245_v19 = vpack.c.bf16 %v177_v15, %v174_v14 }
 0x120   :  { %v240_v20 = vpack.c.bf16 %v169_v18, %v166_v17 }
 0x121   :  { %247 = vst [vmem:[#allocation7 + $0x8] sm:$0xff] %v245_v19  }
 0x122   :  { %241 = vst [vmem:[#allocation7] sm:$0xff] %v240_v20  }
 0x123   :  { %348 = shalt.err (!%p345_p6)
}
 0x124   :  { %s349_s15 = scalar_lea.hbm %s441_s3, 256 }
 0x125   :  { %p350_p7 = scmp.ne.s32.totalorder %s441_s3, %s349_s15  ;;  %p353_p8 = scmp.lt.u32.totalorder %s349_s15, %s441_s3 }
 0x127   :  { %p355_p9 = pnand %p353_p8, %p350_p7 }
 0x129   :  { %358 = shalt.err (!%p355_p9)
}
 0x12a   :  { %211 = dma.vmem_to_hbm [thread:$0]  %s206_s12, 256, %s441_s3, [#allocation4], %s366_s22, %s366_s22, %s367_s23  }
 0x12b   :  { %363 = dma.done.wait [#allocation4], 256  }
 0x12c   :  { %364 = vsyncadd [#allocation4], 4294967040 }
 0x12d   :  { %215 = vsyncpa [#allocation3], 1 }
 0x12e   :  { %216 = vsyncpa [#allocation6], 1 }
 0x12f   :  { %217 = vsyncpa [#allocation4], 1 }

</bundles_post_ra>
